<compile_context>
chip_gen: v7x
topology: tpu7x:2x2x1
jax: 0.10.0
libtpu: 0.0.40
codegen_flags: <defaults>
</compile_context>

<pallas_src>
import functools

import jax
import jax.numpy as jnp
from jax.experimental import pallas as pl
from jax.experimental.pallas import tpu as pltpu

HP = 128   # lane-padded feature width (real input/hidden features occupy the first columns)
EP = 128   # lane-padded embedding width (real embed_dim occupies the first columns)


# ----------------------------- fused all-layers + pooling kernel -----------------------------
def _fused_gcn_kernel(x_hbm_ref, ahat_ref, mask_ref, maskt_ref,
                      wg1_ref, w2_ref, vec_ref,
                      womax_ref, womean_ref, bo_ref,
                      o_ref, xcur_ref, xsem, *, hidden_real):
    f32 = jnp.float32
    bf16 = jnp.bfloat16
    layer = pl.program_id(0)
    n_layers = pl.num_programs(0)

    # One-time HBM -> VMEM copy of the (padded) input node features into the resident scratch.
    @pl.when(layer == 0)
    def _():
        cp = pltpu.make_async_copy(x_hbm_ref, xcur_ref, xsem)
        cp.start()
        cp.wait()

    x = xcur_ref[...]                                            # (N, HP) f32, resident

    # Per-layer vector params, one (8, HP) slab: rows [bg1, bn_g, bn_b, b2, ln_g, ln_b, 0, 0].
    vec = vec_ref[0]
    bg1, bn_g, bn_b = vec[0:1, :], vec[1:2, :], vec[2:3, :]
    b2, ln_g, ln_b = vec[3:4, :], vec[4:5, :], vec[5:6, :]

    # ---- GCNConv folded into MLP Linear #1:  h1 = A_hat @ X @ (Wg W1) + (bg W1 + b1) ----
    ax = jnp.dot(ahat_ref[...], x.astype(bf16), preferred_element_type=f32)        # (N, HP)
    h1 = jnp.dot(ax.astype(bf16), wg1_ref[0], preferred_element_type=f32) + bg1

    # ---- BatchNorm1d (batch statistics, track_running_stats=False) + ReLU ----
    mu = jnp.mean(h1, axis=0, keepdims=True)                     # global: all nodes in one block
    var = jnp.mean((h1 - mu) ** 2, axis=0, keepdims=True)        # biased variance (PyTorch BN)
    h1 = (h1 - mu) * jax.lax.rsqrt(var + 1e-5) * bn_g + bn_b
    h1 = jnp.maximum(h1, 0.0)

    # ---- MLP Linear #2 ----
    h2 = jnp.dot(h1.astype(bf16), w2_ref[0], preferred_element_type=f32) + b2

    # ---- LayerNorm over the real hidden width (centered form; padded cols of h2 are 0) ----
    cmask = (jax.lax.broadcasted_iota(jnp.int32, (1, HP), 1) < hidden_real).astype(f32)
    inv_h = jnp.float32(1.0 / hidden_real)
    mu2 = jnp.sum(h2, axis=1, keepdims=True) * inv_h
    diff = (h2 - mu2) * cmask
    var2 = jnp.sum(diff * diff, axis=1, keepdims=True) * inv_h
    hn = diff * jax.lax.rsqrt(var2 + 1e-5) * ln_g + ln_b

    out = jnp.where(hn >= 0, hn, 0.1 * hn)                       # leaky_relu(negative_slope=0.1)

    # Keep features resident for the next layer; skip the VMEM store on the final grid step.
    @pl.when(layer != n_layers - 1)
    def _():
        xcur_ref[...] = out

    # ---- last layer: fused gmp/gap pooling + concat + final Linear ----
    @pl.when(layer == n_layers - 1)
    def _():
        m = mask_ref[...]                                        # (G, N) bf16 graph membership
        raw_counts = jnp.sum(m.astype(f32), axis=1, keepdims=True)   # exact (entries are 0/1)
        counts = jnp.maximum(raw_counts, 1.0)
        out_bf = out.astype(bf16)
        mean = jnp.dot(m, out_bf, preferred_element_type=f32) / counts          # gap: (G, HP)

        # gmp: per-graph masked max, unrolled at trace time (no (G, N, HP) temporary).
        mt = maskt_ref[...]                                      # (N, G) f32
        rows = []
        for gi in range(maskt_ref.shape[1]):
            cm = mt[:, gi:gi + 1]                                # (N, 1) static lane slice
            rows.append(jnp.max(jnp.where(cm > 0, out, f32(-1e30)), axis=0, keepdims=True))
        mx = jnp.concatenate(rows, axis=0)                       # gmp: (G, HP)
        mx = jnp.where(raw_counts > 0.5, mx, 0.0)                # empty graph -> 0, not -1e30

        # cat([gmp, gap], 1) @ W_out + b_out, with W_out pre-split into its max / mean halves.
        o_ref[...] = (jnp.dot(mx.astype(bf16), womax_ref[...], preferred_element_type=f32)
                      + jnp.dot(mean.astype(bf16), womean_ref[...], preferred_element_type=f32)
                      + bo_ref[...])


def gcn_graph_forward(x, ahat, mask, params, *, input_dim, hidden_dim, embed_dim):
    n = x.shape[0]
    g = mask.shape[0]
    num_layers = params["wg1"].shape[0]

    x_pad = jnp.zeros((n, HP), jnp.float32).at[:, :input_dim].set(x)
    ahat_bf16 = ahat.astype(jnp.bfloat16)
    mask_bf16 = mask.astype(jnp.bfloat16)
    maskt = jnp.asarray(mask, jnp.float32).T                     # (N, G) for max-pool slices

    const2 = lambda shape: pl.BlockSpec(shape, lambda l: (0, 0))       # resident across layers
    stacked = lambda shape: pl.BlockSpec(shape, lambda l: (l, 0, 0))   # per-layer slice

    in_specs = [
        pl.BlockSpec(memory_space=pl.ANY),   # x_pad: raw HBM ref, copied into VMEM once
        const2((n, n)),                      # A_hat (bf16)
        const2((g, n)),                      # mask (bf16) for mean-pool matmul
        const2((n, g)),                      # mask^T (f32) for per-graph max-pool slices
        stacked((1, HP, HP)),                # folded Wg@W1 per layer (bf16)
        stacked((1, HP, HP)),                # W2 per layer (bf16)
        stacked((1, 8, HP)),                 # packed per-layer vector params (f32)
        const2((HP, EP)),                    # W_out, gmp half (bf16)
        const2((HP, EP)),                    # W_out, gap half (bf16)
        const2((1, EP)),                     # b_out (f32)
    ]

    args = (x_pad, ahat_bf16, mask_bf16, maskt,
            params["wg1"], params["w2"], params["vecs"],
            params["wo_max"], params["wo_mean"], params["b_out"])

    # VMEM budget from actual buffer sizes, clamped to this device's physical VMEM.
    per_layer_slab = 2 * HP * HP * 2 + 8 * HP * 4                 # wg1 + w2 (bf16) + vecs (f32)
    vmem_need = (2 * (ahat_bf16.nbytes + mask_bf16.nbytes + maskt.nbytes
                      + params["wo_max"].nbytes + params["wo_mean"].nbytes
                      + params["b_out"].nbytes + per_layer_slab)
                 + n * HP * 4 + 2 * g * EP * 4 + (4 << 20))
    try:
        vmem_cap = pltpu.get_tpu_info().vmem_capacity_bytes
    except Exception:
        vmem_cap = 64 * 1024 * 1024
    vmem_limit = int(min(max(vmem_need, 16 << 20), 0.8 * vmem_cap))

    flops = (num_layers * (2 * n * n * HP + 4 * n * HP * HP)
             + 2 * g * n * HP + 4 * g * HP * EP)
    bytes_accessed = sum(int(a.nbytes) for a in args) + g * EP * 4
    cost = pl.CostEstimate(flops=flops,
                           transcendentals=num_layers * (n + HP),
                           bytes_accessed=bytes_accessed)

    kern = functools.partial(_fused_gcn_kernel, hidden_real=hidden_dim)

    out_pad = pl.pallas_call(
        kern,
        out_shape=jax.ShapeDtypeStruct((g, EP), jnp.float32),
        grid_spec=pltpu.PrefetchScalarGridSpec(
            num_scalar_prefetch=0,
            grid=(num_layers,),
            in_specs=in_specs,
            out_specs=pl.BlockSpec((g, EP), lambda l: (0, 0)),
            scratch_shapes=[pltpu.VMEM((n, HP), jnp.float32),    # resident node features
                            pltpu.SemaphoreType.DMA],            # one-time x copy
        ),
        compiler_params=pltpu.CompilerParams(
            dimension_semantics=("arbitrary",),   # layer l+1 depends on layer l => sequential
            vmem_limit_bytes=vmem_limit,
        ),
        cost_estimate=cost,
    )(*args)
    return out_pad[:, :embed_dim]


# ------------------------------------ glue (plain JAX) ------------------------------------
def build_ahat(edge_index, num_nodes):
    """Dense D^{-1/2}(A+I)D^{-1/2}, matching torch_geometric GCNConv gcn_norm."""
    src, dst = edge_index
    a = jnp.zeros((num_nodes, num_nodes), jnp.float32)
    a = a.at[dst, src].add(1.0)                     # message: src -> dst aggregation
    a = a + jnp.eye(num_nodes, dtype=jnp.float32)   # add self loops
    deg = jnp.sum(a, axis=1)                        # in-degree incl. self loop
    dinv = jax.lax.rsqrt(deg)
    return dinv[:, None] * a * dinv[None, :]


def init_params(key, input_dim, hidden_dim, embed_dim, num_layers):
    def pad2(a, rows, cols):
        out = jnp.zeros((rows, cols), jnp.float32)
        return out.at[:a.shape[0], :a.shape[1]].set(a)

    wg1_list, w2_list, vec_list = [], [], []
    for i in range(num_layers):
        din = input_dim if i == 0 else hidden_dim
        key, k0, k1, k2, k3, k4 = jax.random.split(key, 6)
        wg = jax.random.normal(k0, (din, hidden_dim), jnp.float32) * 0.1
        bg = jnp.zeros((1, hidden_dim), jnp.float32)             # GCNConv bias
        w1 = jax.random.normal(k1, (hidden_dim, hidden_dim), jnp.float32) * 0.1
        b1 = jax.random.normal(k2, (1, hidden_dim), jnp.float32) * 0.01
        w2 = jax.random.normal(k3, (hidden_dim, hidden_dim), jnp.float32) * 0.1
        b2 = jax.random.normal(k4, (1, hidden_dim), jnp.float32) * 0.01
        bn_g = jnp.ones((1, hidden_dim), jnp.float32)
        bn_b = jnp.zeros((1, hidden_dim), jnp.float32)
        ln_g = jnp.ones((1, hidden_dim), jnp.float32)
        ln_b = jnp.zeros((1, hidden_dim), jnp.float32)

        # Fold: (A X Wg + bg) @ W1 + b1  ==  A X (Wg W1) + (bg W1 + b1)   (no nonlinearity between)
        wg1 = wg @ w1
        bg1 = bg @ w1 + b1

        wg1_list.append(pad2(wg1, HP, HP))
        w2_list.append(pad2(w2, HP, HP))
        vec = jnp.zeros((8, HP), jnp.float32)
        vec = vec.at[0, :hidden_dim].set(bg1[0])
        vec = vec.at[1, :hidden_dim].set(bn_g[0])
        vec = vec.at[2, :hidden_dim].set(bn_b[0])
        vec = vec.at[3, :hidden_dim].set(b2[0])
        vec = vec.at[4, :hidden_dim].set(ln_g[0])
        vec = vec.at[5, :hidden_dim].set(ln_b[0])
        vec_list.append(vec)

    key, k1, k2 = jax.random.split(key, 3)
    w_out = jax.random.normal(k1, (2 * hidden_dim, embed_dim), jnp.float32) * 0.1
    b_out = jax.random.normal(k2, (1, embed_dim), jnp.float32) * 0.01

    return dict(
        wg1=jnp.stack(wg1_list).astype(jnp.bfloat16),
        w2=jnp.stack(w2_list).astype(jnp.bfloat16),
        vecs=jnp.stack(vec_list),
        wo_max=pad2(w_out[:hidden_dim], HP, EP).astype(jnp.bfloat16),    # gmp half of cat
        wo_mean=pad2(w_out[hidden_dim:], HP, EP).astype(jnp.bfloat16),   # gap half of cat
        b_out=pad2(b_out, 1, EP),
    )


if __name__ == "__main__":
    input_dim, hidden_dim, embed_dim, num_layers = 16, 32, 8, 2
    nodes_per_graph, num_graphs = 8, 2
    num_nodes = nodes_per_graph * num_graphs

    key = jax.random.PRNGKey(0)
    kx, kp = jax.random.split(key)
    x = jax.random.normal(kx, (num_nodes, input_dim), jnp.float32)

    # two graphs, ring topology, undirected edges; edge_attr is unused by the reference forward.
    src, dst = [], []
    for gi in range(num_graphs):
        base = gi * nodes_per_graph
        for i in range(nodes_per_graph):
            a, b = base + i, base + (i + 1) % nodes_per_graph
            src += [a, b]
            dst += [b, a]
    edge_index = jnp.array([src, dst], dtype=jnp.int32)
    batch = jnp.repeat(jnp.arange(num_graphs, dtype=jnp.int32), nodes_per_graph)

    ahat = build_ahat(edge_index, num_nodes)
    mask = (batch[None, :] == jnp.arange(num_graphs, dtype=jnp.int32)[:, None]).astype(jnp.float32)

    params = init_params(kp, input_dim, hidden_dim, embed_dim, num_layers)

    out = gcn_graph_forward(x, ahat, mask, params,
                            input_dim=input_dim, hidden_dim=hidden_dim, embed_dim=embed_dim)
    jax.block_until_ready(out)
    assert out.shape == (num_graphs, embed_dim)
    print("KERNEL_OK")
</pallas_src>

<mosaic_0001>
module attributes {stable_mosaic.version = 11 : i64} {
  func.func @_fused_gcn_kernel(%arg0: i32, %arg1: memref<16x128xf32, #tpu.memory_space<any>>, %arg2: memref<16x16xbf16, #tpu.memory_space<vmem>>, %arg3: memref<2x16xbf16, #tpu.memory_space<vmem>>, %arg4: memref<16x2xf32, #tpu.memory_space<vmem>>, %arg5: memref<1x128x128xbf16, #tpu.memory_space<vmem>>, %arg6: memref<1x128x128xbf16, #tpu.memory_space<vmem>>, %arg7: memref<1x8x128xf32, #tpu.memory_space<vmem>>, %arg8: memref<128x128xbf16, #tpu.memory_space<vmem>>, %arg9: memref<128x128xbf16, #tpu.memory_space<vmem>>, %arg10: memref<1x128xf32, #tpu.memory_space<vmem>>, %arg11: memref<2x128xf32, #tpu.memory_space<vmem>>, %arg12: memref<16x128xf32, #tpu.memory_space<vmem>>, %arg13: memref<!tpu.dma_semaphore, #tpu.memory_space<semaphore_mem>>) attributes {dimension_semantics = [#tpu.dimension_semantics<arbitrary>], iteration_bounds = array<i64: 2>, scalar_prefetch = 0 : i64, scratch_operands = 2 : i64, tpu.core_type = #tpu.core_type<tc>, window_params = [{}, {pipeline_mode = #tpu.pipeline_mode<synchronous>, transform_indices = @transform_1, window_bounds = array<i64: 16, 16>}, {pipeline_mode = #tpu.pipeline_mode<synchronous>, transform_indices = @transform_2, window_bounds = array<i64: 2, 16>}, {pipeline_mode = #tpu.pipeline_mode<synchronous>, transform_indices = @transform_3, window_bounds = array<i64: 16, 2>}, {transform_indices = @transform_4, window_bounds = array<i64: 1, 128, 128>}, {transform_indices = @transform_5, window_bounds = array<i64: 1, 128, 128>}, {transform_indices = @transform_6, window_bounds = array<i64: 1, 8, 128>}, {pipeline_mode = #tpu.pipeline_mode<synchronous>, transform_indices = @transform_7, window_bounds = array<i64: 128, 128>}, {pipeline_mode = #tpu.pipeline_mode<synchronous>, transform_indices = @transform_8, window_bounds = array<i64: 128, 128>}, {pipeline_mode = #tpu.pipeline_mode<synchronous>, transform_indices = @transform_9, window_bounds = array<i64: 1, 128>}, {pipeline_mode = #tpu.pipeline_mode<synchronous>, transform_indices = @transform_10, window_bounds = array<i64: 2, 128>}]} {
    %c0_i32 = arith.constant 0 : i32
    %0 = arith.cmpi eq, %arg0, %c0_i32 : i32
    %1 = arith.extui %0 : i1 to i32
    %c0_i32_0 = arith.constant 0 : i32
    %2 = arith.cmpi ne, %1, %c0_i32_0 : i32
    scf.if %2 {
      tpu.enqueue_dma source(%arg1 : memref<16x128xf32, #tpu.memory_space<any>>) target(%arg12 : memref<16x128xf32, #tpu.memory_space<vmem>>) target_semaphore(%arg13 : memref<!tpu.dma_semaphore, #tpu.memory_space<semaphore_mem>>)
      tpu.wait_dma2 semaphore(%arg13 : memref<!tpu.dma_semaphore, #tpu.memory_space<semaphore_mem>>) src(%arg1 : memref<16x128xf32, #tpu.memory_space<any>>) dst(%arg12 : memref<16x128xf32, #tpu.memory_space<vmem>>)
    } else {
    }
    %c0 = arith.constant 0 : index
    %c0_1 = arith.constant 0 : index
    %3 = vector.load %arg12[%c0, %c0_1] : memref<16x128xf32, #tpu.memory_space<vmem>>, vector<16x128xf32>
    %c0_2 = arith.constant 0 : index
    %c0_3 = arith.constant 0 : index
    %c0_4 = arith.constant 0 : index
    %4 = vector.load %arg7[%c0_2, %c0_3, %c0_4] : memref<1x8x128xf32, #tpu.memory_space<vmem>>, vector<1x8x128xf32>
    %5 = vector.shape_cast %4 : vector<1x8x128xf32> to vector<8x128xf32>
    %6 = vector.extract_strided_slice %5 {offsets = [0, 0], sizes = [1, 128], strides = [1, 1]} : vector<8x128xf32> to vector<1x128xf32>
    %7 = vector.extract_strided_slice %5 {offsets = [1, 0], sizes = [1, 128], strides = [1, 1]} : vector<8x128xf32> to vector<1x128xf32>
    %8 = vector.extract_strided_slice %5 {offsets = [2, 0], sizes = [1, 128], strides = [1, 1]} : vector<8x128xf32> to vector<1x128xf32>
    %9 = vector.extract_strided_slice %5 {offsets = [3, 0], sizes = [1, 128], strides = [1, 1]} : vector<8x128xf32> to vector<1x128xf32>
    %10 = vector.extract_strided_slice %5 {offsets = [4, 0], sizes = [1, 128], strides = [1, 1]} : vector<8x128xf32> to vector<1x128xf32>
    %11 = vector.extract_strided_slice %5 {offsets = [5, 0], sizes = [1, 128], strides = [1, 1]} : vector<8x128xf32> to vector<1x128xf32>
    %c0_5 = arith.constant 0 : index
    %c0_6 = arith.constant 0 : index
    %12 = vector.load %arg2[%c0_5, %c0_6] : memref<16x16xbf16, #tpu.memory_space<vmem>>, vector<16x16xbf16>
    %13 = arith.truncf %3 : vector<16x128xf32> to vector<16x128xbf16>
    %cst = arith.constant dense<0.000000e+00> : vector<16x128xf32>
    %14 = tpu.matmul %12, %13, %cst {dimension_numbers = #tpu.dot_dimension_numbers<[1], [0], [0], [1], [0, 0, 1, 1], [], []>} : vector<16x16xbf16>, vector<16x128xbf16>, vector<16x128xf32> -> vector<16x128xf32>
    %15 = arith.truncf %14 : vector<16x128xf32> to vector<16x128xbf16>
    %c0_7 = arith.constant 0 : index
    %c0_8 = arith.constant 0 : index
    %c0_9 = arith.constant 0 : index
    %16 = vector.load %arg5[%c0_7, %c0_8, %c0_9] : memref<1x128x128xbf16, #tpu.memory_space<vmem>>, vector<1x128x128xbf16>
    %17 = vector.shape_cast %16 : vector<1x128x128xbf16> to vector<128x128xbf16>
    %cst_10 = arith.constant dense<0.000000e+00> : vector<16x128xf32>
    %18 = tpu.matmul %15, %17, %cst_10 {dimension_numbers = #tpu.dot_dimension_numbers<[1], [0], [0], [1], [0, 0, 1, 1], [], []>} : vector<16x128xbf16>, vector<128x128xbf16>, vector<16x128xf32> -> vector<16x128xf32>
    %19 = vector.broadcast %6 : vector<1x128xf32> to vector<16x128xf32>
    %20 = arith.addf %18, %19 : vector<16x128xf32>
    %cst_11 = arith.constant dense<0.000000e+00> : vector<128xf32>
    %21 = vector.multi_reduction <add>, %20, %cst_11 [0] : vector<16x128xf32> to vector<128xf32>
    %22 = vector.shape_cast %21 : vector<128xf32> to vector<1x128xf32>
    %cst_12 = arith.constant 1.600000e+01 : f32
    %23 = vector.broadcast %cst_12 : f32 to vector<1x128xf32>
    %24 = arith.divf %22, %23 : vector<1x128xf32>
    %25 = vector.broadcast %24 : vector<1x128xf32> to vector<16x128xf32>
    %26 = arith.subf %20, %25 : vector<16x128xf32>
    %27 = arith.mulf %26, %26 : vector<16x128xf32>
    %cst_13 = arith.constant dense<0.000000e+00> : vector<128xf32>
    %28 = vector.multi_reduction <add>, %27, %cst_13 [0] : vector<16x128xf32> to vector<128xf32>
    %29 = vector.shape_cast %28 : vector<128xf32> to vector<1x128xf32>
    %cst_14 = arith.constant 1.600000e+01 : f32
    %30 = vector.broadcast %cst_14 : f32 to vector<1x128xf32>
    %31 = arith.divf %29, %30 : vector<1x128xf32>
    %32 = vector.broadcast %24 : vector<1x128xf32> to vector<16x128xf32>
    %33 = arith.subf %20, %32 : vector<16x128xf32>
    %cst_15 = arith.constant 9.99999974E-6 : f32
    %34 = vector.broadcast %cst_15 : f32 to vector<1x128xf32>
    %35 = arith.addf %31, %34 : vector<1x128xf32>
    %36 = math.rsqrt %35 : vector<1x128xf32>
    %37 = vector.broadcast %36 : vector<1x128xf32> to vector<16x128xf32>
    %38 = arith.mulf %33, %37 : vector<16x128xf32>
    %39 = vector.broadcast %7 : vector<1x128xf32> to vector<16x128xf32>
    %40 = arith.mulf %38, %39 : vector<16x128xf32>
    %41 = vector.broadcast %8 : vector<1x128xf32> to vector<16x128xf32>
    %42 = arith.addf %40, %41 : vector<16x128xf32>
    %cst_16 = arith.constant 0.000000e+00 : f32
    %43 = vector.broadcast %cst_16 : f32 to vector<16x128xf32>
    %44 = arith.maximumf %42, %43 : vector<16x128xf32>
    %45 = arith.truncf %44 : vector<16x128xf32> to vector<16x128xbf16>
    %c0_17 = arith.constant 0 : index
    %c0_18 = arith.constant 0 : index
    %c0_19 = arith.constant 0 : index
    %46 = vector.load %arg6[%c0_17, %c0_18, %c0_19] : memref<1x128x128xbf16, #tpu.memory_space<vmem>>, vector<1x128x128xbf16>
    %47 = vector.shape_cast %46 : vector<1x128x128xbf16> to vector<128x128xbf16>
    %cst_20 = arith.constant dense<0.000000e+00> : vector<16x128xf32>
    %48 = tpu.matmul %45, %47, %cst_20 {dimension_numbers = #tpu.dot_dimension_numbers<[1], [0], [0], [1], [0, 0, 1, 1], [], []>} : vector<16x128xbf16>, vector<128x128xbf16>, vector<16x128xf32> -> vector<16x128xf32>
    %49 = vector.broadcast %9 : vector<1x128xf32> to vector<16x128xf32>
    %50 = arith.addf %48, %49 : vector<16x128xf32>
    %51 = tpu.iota {dimensions = array<i32: 1>} : vector<1x128xi32>
    %c32_i32 = arith.constant 32 : i32
    %52 = vector.broadcast %c32_i32 : i32 to vector<1x128xi32>
    %53 = arith.cmpi slt, %51, %52 : vector<1x128xi32>
    %54 = arith.extui %53 : vector<1x128xi1> to vector<1x128xi32>
    %55 = arith.sitofp %54 : vector<1x128xi32> to vector<1x128xf32>
    %cst_21 = arith.constant dense<0.000000e+00> : vector<16xf32>
    %56 = vector.multi_reduction <add>, %50, %cst_21 [1] : vector<16x128xf32> to vector<16xf32>
    %57 = vector.shape_cast %56 : vector<16xf32> to vector<16x1xf32>
    %cst_22 = arith.constant 3.125000e-02 : f32
    %58 = vector.broadcast %cst_22 : f32 to vector<16x1xf32>
    %59 = arith.mulf %57, %58 : vector<16x1xf32>
    %60 = vector.broadcast %59 : vector<16x1xf32> to vector<16x128xf32>
    %61 = arith.subf %50, %60 : vector<16x128xf32>
    %62 = vector.broadcast %55 : vector<1x128xf32> to vector<16x128xf32>
    %63 = arith.mulf %61, %62 : vector<16x128xf32>
    %64 = arith.mulf %63, %63 : vector<16x128xf32>
    %cst_23 = arith.constant dense<0.000000e+00> : vector<16xf32>
    %65 = vector.multi_reduction <add>, %64, %cst_23 [1] : vector<16x128xf32> to vector<16xf32>
    %66 = vector.shape_cast %65 : vector<16xf32> to vector<16x1xf32>
    %cst_24 = arith.constant 3.125000e-02 : f32
    %67 = vector.broadcast %cst_24 : f32 to vector<16x1xf32>
    %68 = arith.mulf %66, %67 : vector<16x1xf32>
    %cst_25 = arith.constant 9.99999974E-6 : f32
    %69 = vector.broadcast %cst_25 : f32 to vector<16x1xf32>
    %70 = arith.addf %68, %69 : vector<16x1xf32>
    %71 = math.rsqrt %70 : vector<16x1xf32>
    %72 = vector.broadcast %71 : vector<16x1xf32> to vector<16x128xf32>
    %73 = arith.mulf %63, %72 : vector<16x128xf32>
    %74 = vector.broadcast %10 : vector<1x128xf32> to vector<16x128xf32>
    %75 = arith.mulf %73, %74 : vector<16x128xf32>
    %76 = vector.broadcast %11 : vector<1x128xf32> to vector<16x128xf32>
    %77 = arith.addf %75, %76 : vector<16x128xf32>
    %cst_26 = arith.constant 0.000000e+00 : f32
    %78 = vector.broadcast %cst_26 : f32 to vector<16x128xf32>
    %79 = arith.cmpf oge, %77, %78 : vector<16x128xf32>
    %cst_27 = arith.constant 1.000000e-01 : f32
    %80 = vector.broadcast %cst_27 : f32 to vector<16x128xf32>
    %81 = arith.mulf %80, %77 : vector<16x128xf32>
    %82 = arith.select %79, %77, %81 : vector<16x128xi1>, vector<16x128xf32>
    %c1_i32 = arith.constant 1 : i32
    %83 = arith.cmpi ne, %arg0, %c1_i32 : i32
    %84 = arith.extui %83 : i1 to i32
    %c0_i32_28 = arith.constant 0 : i32
    %85 = arith.cmpi ne, %84, %c0_i32_28 : i32
    scf.if %85 {
      %c0_31 = arith.constant 0 : index
      %c0_32 = arith.constant 0 : index
      %89 = vector.load %arg12[%c0_31, %c0_32] : memref<16x128xf32, #tpu.memory_space<vmem>>, vector<16x128xf32>
      tpu.vector_store %arg12[%c0_31, %c0_32], %82 {strides = array<i32>} : memref<16x128xf32, #tpu.memory_space<vmem>>, vector<16x128xf32>,
    } else {
    }
    %c1_i32_29 = arith.constant 1 : i32
    %86 = arith.cmpi eq, %arg0, %c1_i32_29 : i32
    %87 = arith.extui %86 : i1 to i32
    %c0_i32_30 = arith.constant 0 : i32
    %88 = arith.cmpi ne, %87, %c0_i32_30 : i32
    scf.if %88 {
      %c0_31 = arith.constant 0 : index
      %c0_32 = arith.constant 0 : index
      %89 = vector.load %arg3[%c0_31, %c0_32] : memref<2x16xbf16, #tpu.memory_space<vmem>>, vector<2x16xbf16>
      %90 = arith.extf %89 : vector<2x16xbf16> to vector<2x16xf32>
      %cst_33 = arith.constant dense<0.000000e+00> : vector<2xf32>
      %91 = vector.multi_reduction <add>, %90, %cst_33 [1] : vector<2x16xf32> to vector<2xf32>
      %92 = vector.shape_cast %91 : vector<2xf32> to vector<2x1xf32>
      %cst_34 = arith.constant 1.000000e+00 : f32
      %93 = vector.broadcast %cst_34 : f32 to vector<2x1xf32>
      %94 = arith.maximumf %92, %93 : vector<2x1xf32>
      %95 = arith.truncf %82 : vector<16x128xf32> to vector<16x128xbf16>
      %cst_35 = arith.constant dense<0.000000e+00> : vector<2x128xf32>
      %96 = tpu.matmul %89, %95, %cst_35 {dimension_numbers = #tpu.dot_dimension_numbers<[1], [0], [0], [1], [0, 0, 1, 1], [], []>} : vector<2x16xbf16>, vector<16x128xbf16>, vector<2x128xf32> -> vector<2x128xf32>
      %97 = vector.broadcast %94 : vector<2x1xf32> to vector<2x128xf32>
      %98 = arith.divf %96, %97 : vector<2x128xf32>
      %c0_36 = arith.constant 0 : index
      %c0_37 = arith.constant 0 : index
      %99 = vector.load %arg4[%c0_36, %c0_37] : memref<16x2xf32, #tpu.memory_space<vmem>>, vector<16x2xf32>
      %100 = vector.extract_strided_slice %99 {offsets = [0, 0], sizes = [16, 1], strides = [1, 1]} : vector<16x2xf32> to vector<16x1xf32>
      %cst_38 = arith.constant 0.000000e+00 : f32
      %101 = vector.broadcast %cst_38 : f32 to vector<16x1xf32>
      %102 = arith.cmpf ogt, %100, %101 : vector<16x1xf32>
      %cst_39 = arith.constant -1.000000e+30 : f32
      %103 = vector.shape_cast %102 : vector<16x1xi1> to vector<16x1xi1>
      %104 = vector.broadcast %103 : vector<16x1xi1> to vector<16x128xi1>
      %105 = vector.broadcast %cst_39 : f32 to vector<16x128xf32>
      %106 = arith.select %104, %82, %105 : vector<16x128xi1>, vector<16x128xf32>
      %cst_40 = arith.constant dense<0xFF800000> : vector<128xf32>
      %107 = vector.multi_reduction <maximumf>, %106, %cst_40 [0] : vector<16x128xf32> to vector<128xf32>
      %108 = vector.shape_cast %107 : vector<128xf32> to vector<1x128xf32>
      %109 = vector.extract_strided_slice %99 {offsets = [0, 1], sizes = [16, 1], strides = [1, 1]} : vector<16x2xf32> to vector<16x1xf32>
      %cst_41 = arith.constant 0.000000e+00 : f32
      %110 = vector.broadcast %cst_41 : f32 to vector<16x1xf32>
      %111 = arith.cmpf ogt, %109, %110 : vector<16x1xf32>
      %cst_42 = arith.constant -1.000000e+30 : f32
      %112 = vector.shape_cast %111 : vector<16x1xi1> to vector<16x1xi1>
      %113 = vector.broadcast %112 : vector<16x1xi1> to vector<16x128xi1>
      %114 = vector.broadcast %cst_42 : f32 to vector<16x128xf32>
      %115 = arith.select %113, %82, %114 : vector<16x128xi1>, vector<16x128xf32>
      %cst_43 = arith.constant dense<0xFF800000> : vector<128xf32>
      %116 = vector.multi_reduction <maximumf>, %115, %cst_43 [0] : vector<16x128xf32> to vector<128xf32>
      %117 = vector.shape_cast %116 : vector<128xf32> to vector<1x128xf32>
      %118 = tpu.concatenate %108, %117 in 0 : vector<1x128xf32>, vector<1x128xf32> -> vector<2x128xf32>
      %cst_44 = arith.constant 5.000000e-01 : f32
      %119 = vector.broadcast %cst_44 : f32 to vector<2x1xf32>
      %120 = arith.cmpf ogt, %92, %119 : vector<2x1xf32>
      %cst_45 = arith.constant 0.000000e+00 : f32
      %121 = vector.shape_cast %120 : vector<2x1xi1> to vector<2x1xi1>
      %122 = vector.broadcast %121 : vector<2x1xi1> to vector<2x128xi1>
      %123 = vector.broadcast %cst_45 : f32 to vector<2x128xf32>
      %124 = arith.select %122, %118, %123 : vector<2x128xi1>, vector<2x128xf32>
      %125 = arith.truncf %124 : vector<2x128xf32> to vector<2x128xbf16>
      %c0_46 = arith.constant 0 : index
      %c0_47 = arith.constant 0 : index
      %126 = vector.load %arg8[%c0_46, %c0_47] : memref<128x128xbf16, #tpu.memory_space<vmem>>, vector<128x128xbf16>
      %cst_48 = arith.constant dense<0.000000e+00> : vector<2x128xf32>
      %127 = tpu.matmul %125, %126, %cst_48 {dimension_numbers = #tpu.dot_dimension_numbers<[1], [0], [0], [1], [0, 0, 1, 1], [], []>} : vector<2x128xbf16>, vector<128x128xbf16>, vector<2x128xf32> -> vector<2x128xf32>
      %128 = arith.truncf %98 : vector<2x128xf32> to vector<2x128xbf16>
      %c0_49 = arith.constant 0 : index
      %c0_50 = arith.constant 0 : index
      %129 = vector.load %arg9[%c0_49, %c0_50] : memref<128x128xbf16, #tpu.memory_space<vmem>>, vector<128x128xbf16>
      %cst_51 = arith.constant dense<0.000000e+00> : vector<2x128xf32>
      %130 = tpu.matmul %128, %129, %cst_51 {dimension_numbers = #tpu.dot_dimension_numbers<[1], [0], [0], [1], [0, 0, 1, 1], [], []>} : vector<2x128xbf16>, vector<128x128xbf16>, vector<2x128xf32> -> vector<2x128xf32>
      %131 = arith.addf %127, %130 : vector<2x128xf32>
      %c0_52 = arith.constant 0 : index
      %c0_53 = arith.constant 0 : index
      %132 = vector.load %arg10[%c0_52, %c0_53] : memref<1x128xf32, #tpu.memory_space<vmem>>, vector<1x128xf32>
      %133 = vector.broadcast %132 : vector<1x128xf32> to vector<2x128xf32>
      %134 = arith.addf %131, %133 : vector<2x128xf32>
      %c0_54 = arith.constant 0 : index
      %c0_55 = arith.constant 0 : index
      %135 = vector.load %arg11[%c0_54, %c0_55] : memref<2x128xf32, #tpu.memory_space<vmem>>, vector<2x128xf32>
      tpu.vector_store %arg11[%c0_54, %c0_55], %134 {strides = array<i32>} : memref<2x128xf32, #tpu.memory_space<vmem>>, vector<2x128xf32>,
    } else {
    }
    return
  }
  func.func @transform_1(%arg0: i32) -> (i32, i32) {
    %c0_i32 = arith.constant 0 : i32
    %c0_i32_0 = arith.constant 0 : i32
    %c0_i32_1 = arith.constant 0 : i32
    return %c0_i32, %c0_i32_0 : i32, i32
  }
  func.func @transform_2(%arg0: i32) -> (i32, i32) {
    %c0_i32 = arith.constant 0 : i32
    %c0_i32_0 = arith.constant 0 : i32
    %c0_i32_1 = arith.constant 0 : i32
    return %c0_i32, %c0_i32_0 : i32, i32
  }
  func.func @transform_3(%arg0: i32) -> (i32, i32) {
    %c0_i32 = arith.constant 0 : i32
    %c0_i32_0 = arith.constant 0 : i32
    %c0_i32_1 = arith.constant 0 : i32
    return %c0_i32, %c0_i32_0 : i32, i32
  }
  func.func @transform_4(%arg0: i32) -> (i32, i32, i32) {
    %c0_i32 = arith.constant 0 : i32
    %c0_i32_0 = arith.constant 0 : i32
    %c0_i32_1 = arith.constant 0 : i32
    return %arg0, %c0_i32, %c0_i32_0 : i32, i32, i32
  }
  func.func @transform_5(%arg0: i32) -> (i32, i32, i32) {
    %c0_i32 = arith.constant 0 : i32
    %c0_i32_0 = arith.constant 0 : i32
    %c0_i32_1 = arith.constant 0 : i32
    return %arg0, %c0_i32, %c0_i32_0 : i32, i32, i32
  }
  func.func @transform_6(%arg0: i32) -> (i32, i32, i32) {
    %c0_i32 = arith.constant 0 : i32
    %c0_i32_0 = arith.constant 0 : i32
    %c0_i32_1 = arith.constant 0 : i32
    return %arg0, %c0_i32, %c0_i32_0 : i32, i32, i32
  }
  func.func @transform_7(%arg0: i32) -> (i32, i32) {
    %c0_i32 = arith.constant 0 : i32
    %c0_i32_0 = arith.constant 0 : i32
    %c0_i32_1 = arith.constant 0 : i32
    return %c0_i32, %c0_i32_0 : i32, i32
  }
  func.func @transform_8(%arg0: i32) -> (i32, i32) {
    %c0_i32 = arith.constant 0 : i32
    %c0_i32_0 = arith.constant 0 : i32
    %c0_i32_1 = arith.constant 0 : i32
    return %c0_i32, %c0_i32_0 : i32, i32
  }
  func.func @transform_9(%arg0: i32) -> (i32, i32) {
    %c0_i32 = arith.constant 0 : i32
    %c0_i32_0 = arith.constant 0 : i32
    %c0_i32_1 = arith.constant 0 : i32
    return %c0_i32, %c0_i32_0 : i32, i32
  }
  func.func @transform_10(%arg0: i32) -> (i32, i32) {
    %c0_i32 = arith.constant 0 : i32
    %c0_i32_0 = arith.constant 0 : i32
    %c0_i32_1 = arith.constant 0 : i32
    return %c0_i32, %c0_i32_0 : i32, i32
  }
}

</mosaic_0001>

<bundles_post_ra>
// kernel: tpu_custom_call.1
= control target key start
LH: loop header
LB: loop body
LE: loop exit
PB: predicated region body
PF: predicated region fallthrough
CT: control target
= control target key end

     0   :  { %s2329_s0 = inlined_call_operand.vmem [shape: f32[16,128], index: 0, kind: input, shape index: {}]   ;;  %s2330_s1 = inlined_call_operand.hbm [shape: bf16[16,16], index: 1, kind: input, shape index: {}]   ;;  %s2331_s2 = inlined_call_operand.vmem [shape: bf16[2,16], index: 2, kind: input, shape index: {}]   ;;  %s2332_s3 = inlined_call_operand.vmem [shape: f32[16,2], index: 3, kind: input, shape index: {}]   ;;  %s2333_s4 = inlined_call_operand.hbm [shape: bf16[2,128,128], index: 4, kind: input, shape index: {}]   ;;  %s2334_s5 = inlined_call_operand.hbm [shape: bf16[2,128,128], index: 5, kind: input, shape index: {}]   ;;  %s2335_s6 = inlined_call_operand.vmem [shape: f32[2,8,128], index: 6, kind: input, shape index: {}]   ;;  %s2336_s7 = inlined_call_operand.hbm [shape: bf16[128,128], index: 7, kind: input, shape index: {}]   ;;  %s2337_s8 = inlined_call_operand.hbm [shape: bf16[128,128], index: 8, kind: input, shape index: {}]   ;;  %s2338_s9 = inlined_call_operand.vmem [shape: f32[1,128], index: 9, kind: input, shape index: {}]   ;;  %s2339_s10 = inlined_call_operand.hbm [shape: f32[2,128], index: 10, kind: output, shape index: {}]  }
   0x1   :  { %2355 = sst [smem:[#allocation23_spill]] %s2329_s0 }
   0x2   :  { %2356 = sst [smem:[#allocation24_spill]] %s2331_s2 }
   0x3   :  { %2357 = sst [smem:[#allocation25_spill]] %s2332_s3 }
   0x4   :  { %2358 = sst [smem:[#allocation26_spill]] %s2333_s4 }
   0x5   :  { %2359 = sst [smem:[#allocation27_spill]] %s2336_s7 }
   0x6   :  { %2360 = sst [smem:[#allocation28_spill]] %s2338_s9 }
   0x7   :  { %2361 = sst [smem:[#allocation29_spill]] %s2339_s10 }
   0x8   :  { %15 = vsyncpa [#allocation5], 0 }
   0x9   :  { %16 = vsyncpa [#allocation8], 0 }
   0xa   :  { %18 = vsyncpa [#allocation8 + $0x1], 0 }
   0xb   :  { %19 = vsyncpa [#allocation11], 0 }
   0xc   :  { %20 = vsyncpa [#allocation6], 0  ;;  %s1939_s13 = smov 0   ;;  %s1941_s14 = smov 0  }
   0xd   :  { %s1943_s15 = smov 0   ;;  %s1945_s16 = smov 0  }
   0xe LB: > { %2362 = sst [smem:[#allocation20_spill]] %s1864_s15  ;;  %s1958_s17 = sadd.s32 4294967295, %s1868_s16   ;;  %s1868_s16 = sphi %s1945_s16, %s2390_s16   ;;  %s1864_s15 = sphi %s1943_s15, %s2392_s15   ;;  %s1860_s14 = sphi %s1941_s14, %s2394_s14   ;;  %s1856_s13 = sphi %s1939_s13, %s2393_s13  }
   0xf   : > { %p109_p0 = scmp.ne.s32.totalorder %s1860_s14, %s1856_s13  ;;  %p2340_p1 = scmp.eq.s32.totalorder %s1958_s17, 0 }
  0x10   : > { %p1315_p2 = scmp.ge.s32.totalorder %s1868_s16, 1  ;;  %p256_p3 = scmp.lt.s32.totalorder %s1868_s16, 3 }
  0x11   : > { %p1967_p5 = por %p2340_p1, %p109_p0  ;;  %s1870_s20 = smov [#allocation10]  }
  0x12   : > { %p1971_p6 = pnand %p1315_p2, %p256_p3  ;;  %s287_s21 = sshll.u32 %s1870_s20, 4  ;;  %s288_s21 = int_to_ptr.vmem [resolvable:$true] %s287_s21 }
  0x13   : > { %s2363_s18 = scalar_select %p1967_p5, 1, 0 }
  0x14   : > { %s2364_s19 = scalar_select %p1971_p6, 1, 0 }
  0x15   : > { %p1535_p7 = pneg %p1971_p6  ;;  %s1984_s23 = sadd.s32 1, %s1868_s16  }
  0x16   : > { %2366 = sst [smem:[#allocation21_spill]] %s1984_s23  ;;  %s96_s24 = sadd.s32 1, %s1864_s15 }
  0x17   : > { %p1979_p8 = pnand %p1535_p7, %p2340_p1  ;;  %s93_s25 = ssub.s32 %s1868_s16, %s1984_s23 }
  0x18   : > { %s2367_s7 = sld [smem:[#allocation27_spill]] }
  0x19   : > { %s2365_s22 = scalar_select %p1979_p8, 1, 0 }
  0x1a   : > { %p1997_p10 = pneg %p1979_p8 }
  0x1e   : > { %s1650_s28 = scalar_lea.hbm %s2367_s7, 1024 }
  0x1f   : > { %p1651_p9 = scmp.ne.s32.totalorder %s2367_s7, %s1650_s28  ;;  %p1657_p13 = scmp.lt.u32.totalorder %s1650_s28, %s2367_s7 }
  0x21   : > { %p1653_p11 = pnand %p1997_p10, %p1651_p9 }
  0x23   : > { %p1654_p12 = pneg %p1653_p11 }
  0x25   : > { %p1659_p0 = pnand %p1657_p13, %p1654_p12 }
  0x27   : > { %1662 = shalt.err (!%p1659_p0)
}
  0x28   : > { %s1663_s20 = scalar_lea.vmem %s288_s21, 1024  ;;  %p1671_p4 = scmp.lt.s32.totalorder %s288_s21, %s288_s21 }
  0x29   : > { %p1664_p2 = scmp.ne.s32.totalorder %s288_s21, %s1663_s20  ;;  %p1672_p1 = scmp.lt.s32.totalorder %s1663_s20, %s1663_s20 }
  0x2b   : > { %p1666_p3 = pnand %p1664_p2, %p1997_p10  ;;  %p1673_p5 = por %p1672_p1, %p1671_p4 }
  0x2d   : > { %p1667_p7 = pneg %p1666_p3 }
  0x2f   : > { %p1674_p6 = pnand %p1673_p5, %p1667_p7 }
  0x31   : > { %1677 = shalt.err (!%p1674_p6)
}
  0x32   : > { %s1871_s26 = smov 64   ;;  %s1872_s27 = smov 4  }
  0x33   : > { %1541 = dma.hbm_to_vmem [thread:$0]  (!%p1979_p8), %s2367_s7, 1024, %s288_s21, [#allocation11], %s1871_s26, %s1871_s26, %s1872_s27  }
  0x34   : > { %p94_p1 = scmp.eq.s32.totalorder %s93_s25, 0  ;;  %p103_p4 = scmp.ne.s32.totalorder %s1864_s15, %s1860_s14 }
  0x35   : > { %p104_p5 = scmp.eq.s32.totalorder %s1868_s16, 0  ;;  %p1555_p6 = scmp.lt.s32.totalorder %s1868_s16, 2 }
  0x36   : > { %s2021_s30 = scalar_select %p94_p1, %s1864_s15, %s96_s24  }
  0x37   : > { %p105_p9 = por %p104_p5, %p103_p4  ;;  %s317_s12 = sand.u32 1, %s1868_s16  }
  0x38   : > { %2369 = sst [smem:[#allocation22_spill]] %s2021_s30  ;;  %s319_s13 = sand.u32 1, %s1864_s15  }
  0x39   : > { %s2025_s20 = sshll.u32 %s319_s13, 6  ;;  %s2347_s23 = sshll.u32 %s1868_s16, 10 }
  0x3a   : > { %s2370_s4 = sld [smem:[#allocation26_spill]]  ;;  %s321_s21 = scalar_lea.vmem [#allocation7], %s2025_s20 }
  0x3b   : > { %s328_s24 = sshll.u32 %s321_s21, 4  ;;  %p2036_p11 = pnand %p1555_p6, %p105_p9  ;;  %s2040_s24 = int_to_ptr.vmem [resolvable:$true] %s328_s24 }
  0x3c   : > { %s2042_s28 = scalar_lea.sflag [#allocation8], %s317_s12 }
  0x3d   : > { %s2371_s25 = scalar_select %p2036_p11, 1, 0 }
  0x3e   : > { %p2352_p13 = pneg %p2036_p11 }
  0x40   : > { %s2033_s3 = scalar_lea.hbm %s2370_s4, %s2347_s23  ;;  %s1683_s13 = scalar_lea.hbm %s2370_s4, 2048 }
  0x41   : > { %s1678_s29 = scalar_lea.hbm %s2033_s3, 1024  ;;  %p1684_p3 = scmp.lt.u32.totalorder %s2033_s3, %s2370_s4 }
  0x42   : > { %p1679_p12 = scmp.ne.s32.totalorder %s2033_s3, %s1678_s29  ;;  %p1685_p7 = scmp.lt.u32.totalorder %s1683_s13, %s1678_s29 }
  0x43   : > { %p1687_p4 = scmp.lt.u32.totalorder %s1678_s29, %s2033_s3 }
  0x44   : > { %p1681_p0 = pnand %p2352_p13, %p1679_p12  ;;  %p1686_p1 = por %p1685_p7, %p1684_p3 }
  0x46   : > { %p1682_p2 = pneg %p1681_p0  ;;  %p1688_p5 = por %p1687_p4, %p1686_p1 }
  0x48   : > { %p1689_p6 = pnand %p1688_p5, %p1682_p2 }
  0x4a   : > { %1692 = shalt.err (!%p1689_p6)
}
  0x4b   : > { %s1693_s12 = scalar_lea.vmem %s2040_s24, 1024  ;;  %s1873_s9 = smov [#allocation7]  }
  0x4c   : > { %p1694_p9 = scmp.ne.s32.totalorder %s2040_s24, %s1693_s12  ;;  %s1698_s10 = sshll.u32 %s1873_s9, 4  ;;  %s1699_s10 = int_to_ptr.vmem [resolvable:$false] %s1698_s10 }
  0x4d   : > { %s1700_s23 = scalar_lea.vmem %s1699_s10, 2048  ;;  %p1701_p8 = scmp.lt.s32.totalorder %s2040_s24, %s1699_s10 }
  0x4e   : > { %p1696_p12 = pnand %p1694_p9, %p2352_p13  ;;  %p1702_p3 = scmp.lt.s32.totalorder %s1700_s23, %s1693_s12 }
  0x50   : > { %p1697_p0 = pneg %p1696_p12  ;;  %p1703_p7 = por %p1702_p3, %p1701_p8 }
  0x52   : > { %p1704_p1 = pnand %p1703_p7, %p1697_p0 }
  0x54   : > { %1707 = shalt.err (!%p1704_p1)
}
  0x55   : > { %1548 = dma.hbm_to_vmem [thread:$0]  (!%p2036_p11), %s2033_s3, 1024, %s2040_s24, %s2042_s28, %s1871_s26, %s1871_s26, %s1872_s27  }
  0x56   : > { %s2372_s29 = sshll.u32 %s1868_s16, 10  ;;  %s342_s9 = scalar_lea.vmem [#allocation9], %s2025_s20 }
  0x57   : > { %s2078_s12 = scalar_lea.hbm %s2334_s5, %s2372_s29  ;;  %s349_s10 = sshll.u32 %s342_s9, 4  ;;  %s2102_s10 = int_to_ptr.vmem [resolvable:$true] %s349_s10 }
  0x58   : > { %s1874_s23 = smov [#allocation4]   ;;  %s1708_s15 = scalar_lea.hbm %s2330_s1, 128 }
  0x59   : > { %s268_s4 = sshll.u32 %s1874_s23, 4  ;;  %p1709_p8 = scmp.ne.s32.totalorder %s2330_s1, %s1708_s15  ;;  %s269_s4 = int_to_ptr.vmem [resolvable:$true] %s268_s4 }
  0x5a   : > { %p1715_p5 = scmp.lt.u32.totalorder %s1708_s15, %s2330_s1 }
  0x5b   : > { %p1711_p2 = pnand %p1709_p8, %p1997_p10 }
  0x5d   : > { %p1712_p4 = pneg %p1711_p2 }
  0x5f   : > { %p1717_p6 = pnand %p1715_p5, %p1712_p4 }
  0x61   : > { %1720 = shalt.err (!%p1717_p6)
}
  0x62   : > { %s1721_s20 = scalar_lea.vmem %s269_s4, 128  ;;  %p1729_p3 = scmp.lt.s32.totalorder %s269_s4, %s269_s4 }
  0x63   : > { %p1722_p9 = scmp.ne.s32.totalorder %s269_s4, %s1721_s20  ;;  %p1730_p7 = scmp.lt.s32.totalorder %s1721_s20, %s1721_s20 }
  0x65   : > { %p1724_p12 = pnand %p1722_p9, %p1997_p10  ;;  %p1731_p1 = por %p1730_p7, %p1729_p3 }
  0x67   : > { %p1725_p0 = pneg %p1724_p12 }
  0x69   : > { %p1732_p13 = pnand %p1731_p1, %p1725_p0 }
  0x6b   : > { %1735 = shalt.err (!%p1732_p13)
}
  0x6c   : > { %p2373_p8 = scmp.ne.s32.totalorder %s2365_s22, 0  ;;  %s1875_s7 = smov [#allocation12]  }
  0x6d   : > { %s300_s15 = sshll.u32 %s1875_s7, 4  ;;  %s1736_s29 = scalar_lea.hbm %s2337_s8, 1024  ;;  %s301_s15 = int_to_ptr.vmem [resolvable:$true] %s300_s15 }
  0x6e   : > { %1538 = dma.hbm_to_vmem [thread:$0]  (!%p2373_p8), %s2330_s1, 128, %s269_s4, [#allocation5], %s1871_s26, %s1871_s26, %s1872_s27  }
  0x6f   : > { %p1737_p13 = scmp.ne.s32.totalorder %s2337_s8, %s1736_s29  ;;  %p1743_p5 = scmp.lt.u32.totalorder %s1736_s29, %s2337_s8 }
  0x71   : > { %p1739_p2 = pnand %p1737_p13, %p1997_p10 }
  0x73   : > { %p1740_p4 = pneg %p1739_p2 }
  0x75   : > { %p1745_p6 = pnand %p1743_p5, %p1740_p4 }
  0x77   : > { %1748 = shalt.err (!%p1745_p6)
}
  0x78   : > { %s1749_s4 = scalar_lea.vmem %s301_s15, 1024  ;;  %p1757_p3 = scmp.lt.s32.totalorder %s301_s15, %s301_s15 }
  0x79   : > { %p1750_p9 = scmp.ne.s32.totalorder %s301_s15, %s1749_s4  ;;  %p1758_p7 = scmp.lt.s32.totalorder %s1749_s4, %s1749_s4 }
  0x7b   : > { %p1752_p12 = pnand %p1750_p9, %p1997_p10  ;;  %p1759_p1 = por %p1758_p7, %p1757_p3 }
  0x7d   : > { %p1753_p0 = pneg %p1752_p12 }
  0x7f   : > { %p1760_p11 = pnand %p1759_p1, %p1753_p0 }
  0x81   : > { %1763 = shalt.err (!%p1760_p11)
}
  0x82   : > { %1544 = dma.hbm_to_vmem [thread:$0]  (!%p2373_p8), %s2337_s8, 1024, %s301_s15, [#allocation11], %s1871_s26, %s1871_s26, %s1872_s27  }
  0x83   : > { %s1764_s11 = scalar_lea.hbm %s2078_s12, 1024  ;;  %p2374_p13 = scmp.ne.s32.totalorder %s2371_s25, 0 }
  0x84   : > { %p1765_p10 = scmp.ne.s32.totalorder %s2078_s12, %s1764_s11  ;;  %s1769_s0 = scalar_lea.hbm %s2334_s5, 2048 }
  0x85   : > { %p2375_p2 = pneg %p2374_p13  ;;  %p1770_p5 = scmp.lt.u32.totalorder %s2078_s12, %s2334_s5 }
  0x86   : > { %p1771_p6 = scmp.lt.u32.totalorder %s1769_s0, %s1764_s11  ;;  %p1773_p12 = scmp.lt.u32.totalorder %s1764_s11, %s2078_s12 }
  0x87   : > { %p1767_p4 = pnand %p1765_p10, %p2375_p2 }
  0x88   : > { %p1772_p9 = por %p1771_p6, %p1770_p5 }
  0x89   : > { %p1768_p11 = pneg %p1767_p4 }
  0x8a   : > { %p1774_p0 = por %p1773_p12, %p1772_p9 }
  0x8c   : > { %p1775_p3 = pnand %p1774_p0, %p1768_p11 }
  0x8e   : > { %1778 = shalt.err (!%p1775_p3)
}
  0x8f   : > { %s1779_s15 = scalar_lea.vmem %s2102_s10, 1024  ;;  %p2376_p7 = pmov %p2375_p2 }
  0x90   : > { %p1780_p8 = scmp.ne.s32.totalorder %s2102_s10, %s1779_s15  ;;  %s1876_s30 = smov [#allocation9]  }
  0x91   : > { %s1784_s24 = sshll.u32 %s1876_s30, 4  ;;  %s1785_s24 = int_to_ptr.vmem [resolvable:$false] %s1784_s24 }
  0x92   : > { %p1782_p1 = pnand %p1780_p8, %p2376_p7  ;;  %s1786_s29 = scalar_lea.vmem %s1785_s24, 2048 }
  0x93   : > { %p1787_p2 = scmp.lt.s32.totalorder %s2102_s10, %s1785_s24  ;;  %p1788_p4 = scmp.lt.s32.totalorder %s1786_s29, %s1779_s15 }
  0x94   : > { %p1783_p10 = pneg %p1782_p1 }
  0x95   : > { %p1789_p5 = por %p1788_p4, %p1787_p2 }
  0x97   : > { %p1790_p6 = pnand %p1789_p5, %p1783_p10 }
  0x99   : > { %1793 = shalt.err (!%p1790_p6)
}
  0x9a   : > { %1551 = dma.hbm_to_vmem [thread:$0]  (!%p2374_p13), %s2078_s12, 1024, %s2102_s10, %s2042_s28, %s1871_s26, %s1871_s26, %s1872_s27  }
  0x9b   : > { %p2377_p11 = scmp.ne.s32.totalorder %s2364_s19, 0 }
  0x9c   : > { %p2378_p9 = scmp.eq.s32.totalorder (!%p2377_p11), %s1958_s17, 0 }
  0x9d   : > { %368 = sbr.rel (%p2377_p11) target bundleno = 1695 (0x69f), region = 56 }
  0xa4   : > { %1837 = dma.done.wait (%p2378_p9), [#allocation5], 128   ;;  %p2379_p12 = pmov %p2378_p9 }
  0xa5   : > { %s374_s25 = sand.u32 1, %s1958_s17   ;;  %s376_s13 = sand.u32 1, %s1860_s14  }
  0xa6   : > { %1839 = vsyncadd (%p2379_p12), [#allocation5], 4294967168  ;;  %s1328_s21 = sshll.u32 %s376_s13, 6  ;;  %s375_s9 = scalar_lea.sflag [#allocation8], %s374_s25 }
  0xa7   : > { %s2160_s23 = scalar_lea.vmem [#allocation7], %s1328_s21  ;;  %p2380_p0 = scmp.ne.s32.totalorder %s2363_s18, 0 }
  0xa9   : > { %1841 = dma.done.wait (%p2380_p0), %s375_s9, 2048  }
  0xaa   : > { %1843 = vsyncadd (%p2380_p0), %s375_s9, 4294965248  ;;  %s2166_s19 = scalar_lea.vmem [#allocation9], %s1328_s21  ;;  %p2381_p13 = pmov %p2378_p9 }
  0xab   : > { %p2382_p3 = pmov %p2378_p9 }
  0xac   : > { %1845 = dma.done.wait (%p2381_p13), [#allocation11], 2048  }
  0xad   : > { %1847 = vsyncadd (%p2382_p3), [#allocation11], 4294965248  ;;  %p434_p8 = scmp.lt.s32.totalorder %s1958_s17, 1  ;;  %p2383_p7 = scmp.ne.s32.totalorder %s1958_s17, 0 }
  0xae   : > { %s2384_s3 = sld [smem:[#allocation23_spill]] (!%p2383_p7) }
  0xaf   : > { %s435_s26 = scalar_select %p434_p8, %s1958_s17, 1 }
  0xb0   : > { %442 = sbr.rel (%p2383_p7) target bundleno = 186 (0xba), region = 80 }
  0xb1   : > { %s1332_s27 = sshll.u32 %s435_s26, 3 }
  0xb2   : > { %s2177_s10 = scalar_lea.vmem %s2335_s6, %s1332_s27 }
  0xb4   : > { %v475_v0 = vld [vmem:[%s2384_s3] sm:$0xff] (!%p2383_p7)  ;;  %v477_v1 = vld [vmem:[%s2384_s3 + $0x8] sm:$0xff] (!%p2383_p7) }
  0xb5   : > { %476 = vst [vmem:[#allocation2] sm:$0xff] (!%p2383_p7), %v475_v0  ;;  %478 = vst [vmem:[#allocation2 + $0x8] sm:$0xff] (!%p2383_p7), %v477_v1 }
  0xb7   : > { %486 = vsyncadd [#allocation3], 256 }
  0xb8   : > { %1848 = dma.done.wait [#allocation3], 256 }
  0xb9   : > { %1849 = vsyncadd [#allocation3], 4294967040 }
  0xba PF: > { %v1877_v4 = vmov 0.0   ;;  %vm1878_vm0 = vmmov 0   ;;  %v1605_v6 = vld [vmem:[#allocation4] sm:$0xff]   ;;  %v1606_v7 = vld [vmem:[%s2160_s23] sm:$0xff]   ;;  %vm501_vm1 = vcmask 130048   ;;  %v1607_v8 = vld [vmem:[%s2160_s23 + $0x8] sm:$0xff]   ;;  %v563_v28 = vlaneseq }
  0xbb   : > { %1423 = vmatprep.subr.bf16.mxu0 %v1877_v4  ;;  %1425 = vmatprep.mubr.msk.bf16.mxu0 %vm1878_vm0, %v1877_v4  ;;  %v1608_v9 = vld [vmem:[%s2160_s23 + $0x10] sm:$0xff]   ;;  %v1609_v10 = vld [vmem:[%s2160_s23 + $0x18] sm:$0xff]   ;;  %v1610_v11 = vld [vmem:[%s2160_s23 + $0x20] sm:$0xff]   ;;  %p1353_p1 = scmp.eq.s32.totalorder %s1958_s17, 1 }
  0xbc   : > { %1429 = vmatprep.subr.bf16.mxu1 %v1877_v4  ;;  %1445 = vmatprep.mubr.msk.bf16.mxu1 %vm1878_vm0, %v1877_v4  ;;  %v1611_v12 = vld [vmem:[%s2160_s23 + $0x28] sm:$0xff]   ;;  %v1612_v13 = vld [vmem:[%s2160_s23 + $0x30] sm:$0xff]   ;;  %v1613_v14 = vld [vmem:[%s2160_s23 + $0x38] sm:$0xff]   ;;  %v2224_v29 = vshrl.u32 %v563_v28, 7 }
  0xbd   : > { %1430 = vmatpush3.bf16.msra.mxu1 %v1606_v7  ;;  %v1614_v20 = vld [vmem:[%s2166_s19] sm:$0xff]   ;;  %v1615_v21 = vld [vmem:[%s2166_s19 + $0x8] sm:$0xff]   ;;  %v1616_v22 = vld [vmem:[%s2166_s19 + $0x10] sm:$0xff]  }
  0xbe   : > { %1431 = vmatprep.subr.bf16.mxu1 %v1877_v4  ;;  %v1617_v23 = vld [vmem:[%s2166_s19 + $0x18] sm:$0xff]   ;;  %v1618_v24 = vld [vmem:[%s2166_s19 + $0x20] sm:$0xff]   ;;  %v1619_v25 = vld [vmem:[%s2166_s19 + $0x28] sm:$0xff]   ;;  %v565_v30 = vsub.s32 0, %v2224_v29  ;;  %v683_v60 = vsub.s32 1, %v2224_v29  ;;  %v689_v61 = vsub.s32 2, %v2224_v29 }
  0xbf   : > { %v490_v2 = vld [vmem:[#allocation2] sm:$0xff]  ;;  %v491_v3 = vld [vmem:[#allocation2 + $0x8] sm:$0xff]  ;;  %v1621_v27 = vld [vmem:[%s2166_s19 + $0x38] sm:$0xff]  }
  0xc0   : > { %v495_v5 = vpack.c.bf16 %v491_v3, %v490_v2  ;;  %v1620_v26 = vld [vmem:[%s2166_s19 + $0x30] sm:$0xff]   ;;  %v2228_v31 = vld [vmem:[%s2177_s10] sm:$0xff] }
  0xc1   : > { %1432 = vmatpush3.bf16.msra.mxu1 %v1607_v8  ;;  %v566_v32 = vrot.slane %v2228_v31, %v565_v30  ;;  %v684_v62 = vrot.slane %v2228_v31, %v683_v60  ;;  %v690_v2 = vrot.slane %v2228_v31, %v689_v61 }
  0xc2   : > { %1424 = vmatpush3.bf16.msra.mxu0 %v495_v5  ;;  %1433 = vmatprep.subr.bf16.mxu1 %v1877_v4 }
  0xc3   : > { %1449 = vmatprep.subr.bf16.mxu0 %v1877_v4 }
  0xc5   : > { %1426 = vmatmul.mubr.msk.bf16.vlgmr.msra.gmra.mrb[0].mxu0 %vm501_vm1, %v1605_v6  ;;  %1434 = vmatpush3.bf16.msra.mxu1 %v1608_v9 }
  0xc6   : > { %1465 = vmatprep.mubr.msk.bf16.mxu0 %vm1878_vm0, %v1877_v4  ;;  %1435 = vmatprep.subr.bf16.mxu1 %v1877_v4 }
  0xc7   : > { %1450 = vmatpush3.bf16.msra.mxu0 %v1614_v20 }
  0xc8   : > { %1451 = vmatprep.subr.bf16.mxu0 %v1877_v4 }
  0xc9   : > { %1436 = vmatpush3.bf16.msra.mxu1 %v1609_v10 }
  0xca   : > { %1437 = vmatprep.subr.bf16.mxu1 %v1877_v4 }
  0xcb   : > { %1452 = vmatpush3.bf16.msra.mxu0 %v1615_v21 }
  0xcc   : > { %1453 = vmatprep.subr.bf16.mxu0 %v1877_v4 }
  0xcd   : > { %1438 = vmatpush3.bf16.msra.mxu1 %v1610_v11  ;;  %v714_v11 = vsub.s32 3, %v2224_v29 }
  0xce   : > { %1439 = vmatprep.subr.bf16.mxu1 %v1877_v4 }
  0xcf   : > { %1454 = vmatpush3.bf16.msra.mxu0 %v1616_v22 }
  0xd0   : > { %1455 = vmatprep.subr.bf16.mxu0 %v1877_v4 }
  0xd1   : > { %1440 = vmatpush3.bf16.msra.mxu1 %v1611_v12  ;;  %v715_v12 = vrot.slane %v2228_v31, %v714_v11 }
  0xd2   : > { %1441 = vmatprep.subr.bf16.mxu1 %v1877_v4 }
  0xd3   : > { %1456 = vmatpush3.bf16.msra.mxu0 %v1617_v23 }
  0xd4   : > { %1457 = vmatprep.subr.bf16.mxu0 %v1877_v4 }
  0xd5   : > { %1442 = vmatpush3.bf16.msra.mxu1 %v1612_v13 }
  0xd6   : > { %1443 = vmatprep.subr.bf16.mxu1 %v1877_v4 }
  0xd7   : > { %1458 = vmatpush3.bf16.msra.mxu0 %v1618_v24 }
  0xd8   : > { %1459 = vmatprep.subr.bf16.mxu0 %v1877_v4 }
  0xd9   : > { %1444 = vmatpush3.bf16.msra.mxu1 %v1613_v14 }
  0xdb   : > { %1460 = vmatpush3.bf16.msra.mxu0 %v1619_v25 }
  0xdc   : > { %1461 = vmatprep.subr.bf16.mxu0 %v1877_v4 }
  0xdf   : > { %1462 = vmatpush3.bf16.msra.mxu0 %v1620_v26 }
  0xe0   : > { %1463 = vmatprep.subr.bf16.mxu0 %v1877_v4 }
  0xe3   : > { %1464 = vmatpush3.bf16.msra.mxu0 %v1621_v27 }
 0x198   : > { %v539_v15 = vpop.f32.mrb[0].mxu0 }
 0x199   : > { %v1427_v16 = vpop.f32.mrb[1].mxu0 }
 0x19a   : > { %v542_v17 = vpop.f32.mrb[2].mxu0 }
 0x19b   : > { %v546_v18 = vpack.c.bf16 %v542_v17, %v539_v15  ;;  %v1428_v19 = vpop.f32.mrb[3].mxu0 }
 0x19c   : > { %v806_v19 = vand.u32 127, %v563_v28 }
 0x19d   : > { %1446 = vmatmul.mubr.bf16.vlgmr.msra.gmra.mrb[0].mxu1 %v546_v18 }
 0x19e   : > { %vm807_vm2 = vcmp.lt.s32.totalorder %v806_v19, 32 }
 0x19f   : > { %v1352_v22 = vsel %vm807_vm2, 1.0, %v1877_v4  ;;  %v836_v4 = vsub.s32 4, %v2224_v29 }
 0x270   : > { %v649_v33 = vpop.f32.mrb[0].mxu1 }
 0x271   : > { %v1447_v34 = vpop.f32.mrb[1].mxu1  ;;  %v650_v36 = vadd.f32 %v649_v33, %v566_v32 }
 0x272   : > { %v652_v35 = vpop.f32.mrb[2].mxu1 }
 0x273   : > { %v653_v37 = vadd.f32 %v652_v35, %v566_v32  ;;  %v1448_v38 = vpop.f32.mrb[3].mxu1 }
 0x275   : > { %v656_v39 = vadd.f32 %v653_v37, %v650_v36 }
 0x277   : > { %v657_v40 = vrot.slane %v656_v39, 4 }
 0x279   : > { %v658_v41 = vadd.f32 %v657_v40, %v656_v39  ;;  %v842_v39 = vsub.s32 5, %v2224_v29  ;;  %v837_v40 = vrot.slane %v2228_v31, %v836_v4 }
 0x27b   : > { %v659_v42 = vrot.slane %v658_v41, 2 }
 0x27d   : > { %v660_v43 = vadd.f32 %v659_v42, %v658_v41  ;;  %v843_v42 = vrot.slane %v2228_v31, %v842_v39 }
 0x27f   : > { %v661_v44 = vrot.slane %v660_v43, 1 }
 0x281   : > { %v662_v45 = vadd.f32 %v661_v44, %v660_v43 }
 0x283   : > { %v664_v46 = vmul.f32 0.0625, %v662_v45 }
 0x285   : > { %v665_v47 = vsub.f32 %v650_v36, %v664_v46  ;;  %v666_v48 = vsub.f32 %v653_v37, %v664_v46 }
 0x287   : > { %v667_v49 = vmul.f32 %v665_v47, %v665_v47  ;;  %v668_v50 = vmul.f32 %v666_v48, %v666_v48 }
 0x289   : > { %v669_v51 = vadd.f32 %v668_v50, %v667_v49 }
 0x28b   : > { %v670_v52 = vrot.slane %v669_v51, 4 }
 0x28d   : > { %v671_v53 = vadd.f32 %v670_v52, %v669_v51 }
 0x28f   : > { %v672_v54 = vrot.slane %v671_v53, 2 }
 0x291   : > { %v673_v55 = vadd.f32 %v672_v54, %v671_v53 }
 0x293   : > { %v674_v56 = vrot.slane %v673_v55, 1 }
 0x295   : > { %v675_v57 = vadd.f32 %v674_v56, %v673_v55 }
 0x297   : > { %v676_v58 = vmul.f32 0.0625, %v675_v57 }
 0x299   : > { %v677_v59 = vadd.f32 1e-05, %v676_v58 }
 0x29b   : > { %1622 = vrsqrt.f32 %v677_v59 }
 0x2a5   : > { %v1623_v63 = vpop.eup %1622 }
 0x2a6   : > { %v679_v0 = vmul.f32 %v1623_v63, %v665_v47  ;;  %v680_v1 = vmul.f32 %v1623_v63, %v666_v48 }
 0x2a8   : > { %v685_v3 = vmul.f32 %v684_v62, %v679_v0  ;;  %v686_v5 = vmul.f32 %v684_v62, %v680_v1 }
 0x2aa   : > { %v692_v6 = vadd.f32 %v690_v2, %v686_v5  ;;  %v691_v7 = vadd.f32 %v690_v2, %v685_v3 }
 0x2ac   : > { %v694_v8 = vmax.f32 %v692_v6, 0.0  ;;  %v693_v9 = vmax.f32 %v691_v7, 0.0 }
 0x2ae   : > { %v695_v10 = vpack.c.bf16 %v694_v8, %v693_v9 }
 0x2b0   : > { %1466 = vmatmul.mubr.bf16.vlgmr.msra.gmra.mrb[4].mxu0 %v695_v10 }
 0x383   : > { %v798_v13 = vpop.f32.mrb[4].mxu0 }
 0x384   : > { %v799_v14 = vadd.f32 %v798_v13, %v715_v12  ;;  %v1467_v15 = vpop.f32.mrb[5].mxu0 }
 0x385   : > { %v801_v16 = vpop.f32.mrb[6].mxu0 }
 0x386   : > { %810 = vadd.xlane.f32.xlu0 %v799_v14  ;;  %v1468_v17 = vpop.f32.mrb[7].mxu0  ;;  %v802_v18 = vadd.f32 %v801_v16, %v715_v12 }
 0x38a   : > { %812 = vadd.xlane.f32.xlu0 %v802_v18 }
 0x413   : > { %v811_v20 = vpop.xlane.xlu0 %810 }
 0x414   : > { %v814_v21 = vmul.f32 0.03125, %v811_v20 }
 0x416   : > { %v816_v23 = vsub.f32 %v799_v14, %v814_v21 }
 0x417   : > { %v813_v24 = vpop.xlane.xlu0 %812 }
 0x418   : > { %v815_v25 = vmul.f32 0.03125, %v813_v24  ;;  %v818_v26 = vmul.f32 %v1352_v22, %v816_v23 }
 0x41a   : > { %v817_v27 = vsub.f32 %v802_v18, %v815_v25  ;;  %v820_v30 = vmul.f32 %v818_v26, %v818_v26 }
 0x41c   : > { %822 = vadd.xlane.f32.xlu1 %v820_v30  ;;  %v819_v32 = vmul.f32 %v1352_v22, %v817_v27 }
 0x41e   : > { %v821_v33 = vmul.f32 %v819_v32, %v819_v32 }
 0x420   : > { %824 = vadd.xlane.f32.xlu1 %v821_v33 }
 0x4a9   : > { %v823_v34 = vpop.xlane.xlu1 %822 }
 0x4aa   : > { %v826_v35 = vmul.f32 0.03125, %v823_v34 }
 0x4ac   : > { %v828_v36 = vadd.f32 1e-05, %v826_v35 }
 0x4ad   : > { %v825_v37 = vpop.xlane.xlu1 %824 }
 0x4ae   : > { %1624 = vrsqrt.f32 %v828_v36  ;;  %v827_v28 = vmul.f32 0.03125, %v825_v37 }
 0x4b0   : > { %v829_v38 = vadd.f32 1e-05, %v827_v28 }
 0x4b2   : > { %1626 = vrsqrt.f32 %v829_v38 }
 0x4b8   : > { %v1625_v41 = vpop.eup %1624 }
 0x4b9   : > { %v832_v43 = vmul.f32 %v1625_v41, %v818_v26 }
 0x4bb   : > { %v838_v44 = vmul.f32 %v837_v40, %v832_v43 }
 0x4bc   : > { %v1627_v45 = vpop.eup %1626 }
 0x4bd   : > { %v844_v46 = vadd.f32 %v843_v42, %v838_v44  ;;  %v833_v47 = vmul.f32 %v1627_v45, %v819_v32 }
 0x4bf   : > { %vm846_vm3 = vcmp.ge.f32.partialorder %v844_v46, 0.0  ;;  %v848_v48 = vmul.f32 0.1, %v844_v46  ;;  %v839_v49 = vmul.f32 %v837_v40, %v833_v47  ;;  %855 = sbr.rel (%p1353_p1) target bundleno = 1223 (0x4c7), region = 118 }
 0x4c1   : > { %v2242_v50 = vsel %vm846_vm3, %v844_v46, %v848_v48  ;;  %v845_v51 = vadd.f32 %v843_v42, %v839_v49 }
 0x4c2   : > { %856 = vst [vmem:[#allocation2] sm:$0xff] (!%p1353_p1), %v2242_v50 }
 0x4c3   : > { %vm847_vm4 = vcmp.ge.f32.partialorder %v845_v51, 0.0  ;;  %v849_v52 = vmul.f32 0.1, %v845_v51 }
 0x4c5   : > { %v2244_v53 = vsel %vm847_vm4, %v845_v51, %v849_v52 }
 0x4c6   : > { %857 = vst [vmem:[#allocation2 + $0x8] sm:$0xff] %v2244_v53 }
 0x4c7 PF: > { %p1354_p10 = scmp.ne.s32.totalorder %s1958_s17, 1 }
 0x4c8   : > { %v869_v29 = vpack.c.bf16 (!%p1354_p10), %v2244_v53, %v2242_v50  ;;  %s2385_s0 = sld [smem:[#allocation24_spill]] (!%p1354_p10)  ;;  %vm864_vm5 = vcmask (!%p1354_p10), 123904   ;;  %s2386_s15 = sld [smem:[#allocation25_spill]] (!%p1354_p10)  ;;  %v1879_v55 = vmov (!%p1354_p10), 0.0   ;;  %vm1880_vm6 = vmmov (!%p1354_p10), 0   ;;  %v1632_v60 = vld [vmem:[#allocation10] sm:$0xff] (!%p1354_p10)  }
 0x4c9   : > { %861 = sbr.rel (%p1354_p10) target bundleno = 1664 (0x680), region = 122  ;;  %1469 = vmatprep.subr.bf16.mxu0 (!%p1354_p10), %v1879_v55  ;;  %1471 = vmatprep.mubr.msk.bf16.mxu0 (!%p1354_p10), %vm1880_vm6, %v1879_v55  ;;  %v1881_v58 = vmov (!%p1354_p10), 0   ;;  %v1633_v63 = vld [vmem:[#allocation10 + $0x8] sm:$0xff] (!%p1354_p10)   ;;  %v1882_v0 = vmov (!%p1354_p10), 1   ;;  %v1634_v1 = vld [vmem:[#allocation10 + $0x10] sm:$0xff] (!%p1354_p10)   ;;  %v1635_v2 = vld [vmem:[#allocation10 + $0x18] sm:$0xff] (!%p1354_p10)  }
 0x4ca   : > { %1470 = vmatpush3.bf16.msra.mxu0 (!%p1354_p10), %v869_v29  ;;  %1629 = vset.pattern.permute.xlu1 (!%p1354_p10), %v1881_v58  ;;  %v1639_v3 = vld [vmem:[#allocation12] sm:$0xff] (!%p1354_p10)   ;;  %v1641_v6 = vld [vmem:[#allocation12 + $0x8] sm:$0xff] (!%p1354_p10)   ;;  %v1642_v8 = vld [vmem:[#allocation12 + $0x10] sm:$0xff] (!%p1354_p10)   ;;  %vm955_vm14 = vcmask (!%p1354_p10), 1040384   ;;  %s2388_s21 = sld [smem:[#allocation28_spill]] (!%p1354_p10) }
 0x4cb   : > { %1628 = vset.pattern.permute.xlu0 (!%p1354_p10), %v1881_v58  ;;  %1495 = vmatprep.subr.bf16.mxu0 (!%p1354_p10), %v1879_v55  ;;  %v1636_v5 = vld [vmem:[#allocation10 + $0x20] sm:$0xff] (!%p1354_p10)   ;;  %v1637_v7 = vld [vmem:[#allocation10 + $0x28] sm:$0xff] (!%p1354_p10)   ;;  %v1638_v9 = vld [vmem:[#allocation10 + $0x30] sm:$0xff] (!%p1354_p10)  }
 0x4cc   : > { %1475 = vmatprep.subr.bf16.mxu1 (!%p1354_p10), %v1879_v55  ;;  %1491 = vmatprep.mubr.msk.bf16.mxu1 (!%p1354_p10), %vm1880_vm6, %v1879_v55  ;;  %v1643_v10 = vld [vmem:[#allocation12 + $0x18] sm:$0xff] (!%p1354_p10)   ;;  %v1644_v12 = vld [vmem:[#allocation12 + $0x20] sm:$0xff] (!%p1354_p10)   ;;  %v1645_v13 = vld [vmem:[#allocation12 + $0x28] sm:$0xff] (!%p1354_p10)  }
 0x4cd   : > { %1476 = vmatpush3.bf16.msra.mxu1 (!%p1354_p10), %v1639_v3  ;;  %v1640_v11 = vld [vmem:[#allocation10 + $0x38] sm:$0xff] (!%p1354_p10)   ;;  %v1646_v14 = vld [vmem:[#allocation12 + $0x30] sm:$0xff] (!%p1354_p10)  }
 0x4ce   : > { %v862_v31 = vld [vmem:[%s2385_s0] sm:$0x1] (!%p1354_p10)  ;;  %s2387_s30 = smov (!%p1354_p10), %s2386_s15  ;;  %v916_v54 = vld [vmem:[%s2386_s15 + $0x8] sm:$0xff] (!%p1354_p10)  ;;  %1477 = vmatprep.subr.bf16.mxu1 (!%p1354_p10), %v1879_v55  ;;  %v1647_v15 = vld [vmem:[#allocation12 + $0x38] sm:$0xff] (!%p1354_p10)  }
 0x4cf   : > { %v863_v56 = vunpack.c.l.bf16 (!%p1354_p10), %v862_v31  ;;  %vm918_vm7 = vcmp.gt.f32.partialorder (!%p1354_p10), %v916_v54, 0.0  ;;  %v915_v57 = vld [vmem:[%s2387_s30] sm:$0xff] (!%p1354_p10)  ;;  %1472 = vmatmul.mubr.msk.bf16.vlgmr.msra.gmra.mrb[0].mxu0 (!%p1354_p10), %vm501_vm1, %v862_v31 }
 0x4d0   : > { %v920_v59 = vsel %vm918_vm7, 1, %v1881_v58  ;;  %vm917_vm8 = vcmp.gt.f32.partialorder %v915_v57, 0.0  ;;  %1496 = vmatpush3.bf16.msra.mxu0 %v1632_v60  ;;  %1511 = vmatprep.mubr.msk.bf16.mxu0 %vm1880_vm6, %v1879_v55  ;;  %v1375_v31 = vld [vmem:[%s2388_s21] ss:$0 sm:$0xff] }
 0x4d1   : > { %v865_v61 = vsel %vm864_vm5, %v863_v56, 0.0  ;;  %925 = vperm.xlu1 %1629, %v920_v59   ;;  %v919_v62 = vsel %vm917_vm8, 1, %v1881_v58  ;;  %1497 = vmatprep.subr.bf16.mxu0 %v1879_v55 }
 0x4d2   : > { %866 = vadd.xlane.f32.xlu0 %v865_v61  ;;  %1478 = vmatpush3.bf16.msra.mxu1 %v1641_v6 }
 0x4d3   : > { %1479 = vmatprep.subr.bf16.mxu1 %v1879_v55 }
 0x4d4   : > { %1498 = vmatpush3.bf16.msra.mxu0 %v1633_v63 }
 0x4d5   : > { %1630 = vset.pattern.permute.xlu1 %v1882_v0  ;;  %1499 = vmatprep.subr.bf16.mxu0 %v1879_v55 }
 0x4d6   : > { %939 = vperm.xlu1 %1630, %v919_v62   ;;  %1480 = vmatpush3.bf16.msra.mxu1 %v1642_v8 }
 0x4d7   : > { %1481 = vmatprep.subr.bf16.mxu1 %v1879_v55 }
 0x4d8   : > { %1500 = vmatpush3.bf16.msra.mxu0 %v1634_v1 }
 0x4d9   : > { %1501 = vmatprep.subr.bf16.mxu0 %v1879_v55 }
 0x4da   : > { %942 = vperm.xlu1 %1630, %v920_v59   ;;  %1482 = vmatpush3.bf16.msra.mxu1 %v1643_v10 }
 0x4db   : > { %1483 = vmatprep.subr.bf16.mxu1 %v1879_v55 }
 0x4dc   : > { %1502 = vmatpush3.bf16.msra.mxu0 %v1635_v2 }
 0x4dd   : > { %1503 = vmatprep.subr.bf16.mxu0 %v1879_v55 }
 0x4de   : > { %1484 = vmatpush3.bf16.msra.mxu1 %v1644_v12 }
 0x4df   : > { %1485 = vmatprep.subr.bf16.mxu1 %v1879_v55 }
 0x4e0   : > { %1504 = vmatpush3.bf16.msra.mxu0 %v1636_v5 }
 0x4e1   : > { %1505 = vmatprep.subr.bf16.mxu0 %v1879_v55 }
 0x4e2   : > { %1486 = vmatpush3.bf16.msra.mxu1 %v1645_v13 }
 0x4e3   : > { %1487 = vmatprep.subr.bf16.mxu1 %v1879_v55 }
 0x4e4   : > { %1506 = vmatpush3.bf16.msra.mxu0 %v1637_v7 }
 0x4e5   : > { %1507 = vmatprep.subr.bf16.mxu0 %v1879_v55 }
 0x4e6   : > { %1488 = vmatpush3.bf16.msra.mxu1 %v1646_v14 }
 0x4e7   : > { %1489 = vmatprep.subr.bf16.mxu1 %v1879_v55 }
 0x4e8   : > { %922 = vperm.xlu0 %1628, %v919_v62   ;;  %1508 = vmatpush3.bf16.msra.mxu0 %v1638_v9 }
 0x4e9   : > { %1509 = vmatprep.subr.bf16.mxu0 %v1879_v55 }
 0x4ea   : > { %1490 = vmatpush3.bf16.msra.mxu1 %v1647_v15 }
 0x4ec   : > { %1631 = vset.pattern.permute.xlu0 %v1882_v0  ;;  %1510 = vmatpush3.bf16.msra.mxu0 %v1640_v11 }
 0x550   : > { %v926_v16 = vpop.permute.xlu1 %925 }
 0x551   : > { %vm928_vm11 = vcmp.eq.s32.totalorder %v926_v16, 1 }
 0x552   : > { %v930_v25 = vsel %vm928_vm11, %v2244_v53, -1e+30 }
 0x555   : > { %v940_v17 = vpop.permute.xlu1 %939 }
 0x556   : > { %vm944_vm9 = vcmp.eq.s32.totalorder %v940_v17, 1 }
 0x557   : > { %v946_v18 = vsel %vm944_vm9, %v2242_v50, -1e+30 }
 0x559   : > { %v943_v19 = vpop.permute.xlu1 %942 }
 0x55a   : > { %vm945_vm10 = vcmp.eq.s32.totalorder %v943_v19, 1 }
 0x55b   : > { %v947_v20 = vsel %vm945_vm10, %v2244_v53, -1e+30 }
 0x55c   : > { %v948_v21 = vmax.f32 %v946_v18, %v947_v20 }
 0x55e   : > { %v949_v22 = vrot.slane %v948_v21, 4 }
 0x55f   : > { %v867_v23 = vpop.xlane.xlu0 %866 }
 0x560   : > { %v950_v24 = vmax.f32 %v948_v21, %v949_v22  ;;  %vm957_vm13 = vcmp.gt.f32.partialorder %v867_v23, 0.5  ;;  %v868_v42 = vmax.f32 %v867_v23, 1.0 }
 0x561   : > { %vm1372_vm15 = vmpackc.low %vm957_vm13, %vm957_vm13 }
 0x562   : > { %v951_v27 = vrot.slane %v950_v24, 2  ;;  %1648 = vrcp.f32 %v868_v42 }
 0x564   : > { %v952_v33 = vmax.f32 %v950_v24, %v951_v27 }
 0x566   : > { %v953_v36 = vrot.slane %v952_v33, 1 }
 0x567   : > { %v923_v26 = vpop.permute.xlu0 %922 }
 0x568   : > { %vm927_vm12 = vcmp.eq.s32.totalorder %v923_v26, 1  ;;  %v954_v38 = vmax.f32 %v952_v33, %v953_v36 }
 0x569   : > { %v929_v30 = vsel %vm927_vm12, %v2242_v50, -1e+30 }
 0x56a   : > { %v931_v32 = vmax.f32 %v929_v30, %v930_v25 }
 0x56c   : > { %v932_v34 = vrot.slane %v931_v32, 4  ;;  %v1649_v43 = vpop.eup %1648 }
 0x56e   : > { %v933_v35 = vmax.f32 %v931_v32, %v932_v34 }
 0x570   : > { %v934_v37 = vrot.slane %v933_v35, 2 }
 0x572   : > { %v935_v28 = vmax.f32 %v933_v35, %v934_v37 }
 0x574   : > { %v936_v4 = vrot.slane %v935_v28, 1 }
 0x576   : > { %v937_v39 = vmax.f32 %v935_v28, %v936_v4 }
 0x578   : > { %v956_v40 = vsel %vm955_vm14, %v937_v39, %v954_v38 }
 0x579   : > { %v1373_v41 = vpack.c.bf16 %v956_v40, %v956_v40 }
 0x57b   : > { %1512 = vmatmul.mubr.msk.bf16.vlgmr.msra.gmra.mrb[4].mxu0 %vm1372_vm15, %v1373_v41 }
 0x5a2   : > { %v907_v44 = vpop.f32.mrb[0].mxu0 }
 0x5a3   : > { %v914_v45 = vmul.f32 %v1649_v43, %v907_v44  ;;  %v1473_v46 = vpop.f32.mrb[1].mxu0 }
 0x5a4   : > { %v910_v47 = vpop.f32.mrb[2].mxu0 }
 0x5a5   : > { %v978_v48 = vpack.c.bf16 %v914_v45, %v914_v45  ;;  %v1474_v49 = vpop.f32.mrb[3].mxu0 }
 0x5a7   : > { %1492 = vmatmul.mubr.bf16.vlgmr.msra.gmra.mrb[0].mxu1 %v978_v48 }
 0x64e   : > { %v1165_v50 = vpop.f32.mrb[4].mxu0 }
 0x64f   : > { %v1513_v51 = vpop.f32.mrb[5].mxu0 }
 0x650   : > { %v1168_v52 = vpop.f32.mrb[6].mxu0 }
 0x651   : > { %v1514_v53 = vpop.f32.mrb[7].mxu0 }
 0x67a   : > { %v1077_v29 = vpop.f32.mrb[0].mxu1 }
 0x67b   : > { %v1166_v54 = vadd.f32 %v1165_v50, %v1077_v29  ;;  %v1493_v55 = vpop.f32.mrb[1].mxu1 }
 0x67c   : > { %v1080_v56 = vpop.f32.mrb[2].mxu1 }
 0x67d   : > { %v1178_v57 = vadd.f32 %v1375_v31, %v1166_v54  ;;  %v1494_v58 = vpop.f32.mrb[3].mxu1 }
 0x67f   : > { %1179 = vst [vmem:[#allocation13] sm:$0x3] %v1178_v57 }
 0x680 PF: > { %s1883_s9 = smov [#allocation13]  }
 0x681   : > { %s1187_s23 = sshll.u32 %s1883_s9, 4  ;;  %s1188_s23 = int_to_ptr.vmem [resolvable:$true] %s1187_s23 }
 0x682   : > { %s1794_s19 = scalar_lea.vmem %s1188_s23, 32  ;;  %p1801_p6 = scmp.lt.s32.totalorder %s1188_s23, %s1188_s23 }
 0x683   : > { %p1795_p2 = scmp.ne.s32.totalorder %s1188_s23, %s1794_s19  ;;  %p1802_p11 = scmp.lt.s32.totalorder %s1794_s19, %s1794_s19 }
 0x685   : > { %p1796_p4 = pnand %p1795_p2, %p1353_p1  ;;  %p1803_p9 = por %p1802_p11, %p1801_p6 }
 0x687   : > { %p1797_p5 = pneg %p1796_p4 }
 0x689   : > { %p1804_p12 = pnand %p1803_p9, %p1797_p5 }
 0x68b   : > { %1807 = shalt.err (!%p1804_p12)
}
 0x68c   : > { %s2389_s28 = sld [smem:[#allocation29_spill]] }
 0x692   : > { %s1808_s12 = scalar_lea.hbm %s2389_s28, 32 }
 0x693   : > { %p1809_p0 = scmp.ne.s32.totalorder %s2389_s28, %s1808_s12  ;;  %p1814_p8 = scmp.lt.u32.totalorder %s1808_s12, %s2389_s28 }
 0x695   : > { %p1810_p13 = pnand %p1809_p0, %p1353_p1 }
 0x697   : > { %p1811_p3 = pneg %p1810_p13 }
 0x699   : > { %p1816_p7 = pnand %p1814_p8, %p1811_p3 }
 0x69b   : > { %1819 = shalt.err (!%p1816_p7)
}
 0x69c   : > { %1532 = dma.vmem_to_hbm [thread:$0]  (%p1353_p1), %s1188_s23, 32, %s2389_s28, [#allocation6]  }
 0x69d   : > { %1851 = dma.done.wait (%p1353_p1), [#allocation6], 32  }
 0x69e   : > { %1853 = vsyncadd (%p1353_p1), [#allocation6], 4294967264 }
 0x69f PF: > { %s2390_s16 = sld [smem:[#allocation21_spill]]  ;;  %s2391_s22 = sld [smem:[#allocation20_spill]] }
 0x6a0   : > { %s2392_s15 = sld [smem:[#allocation22_spill]]  ;;  %s2393_s13 = smov %s1860_s14 }
 0x6a5   : > { %p23_p10 = scmp.ge.s32.totalorder %s2390_s16, 4   ;;  %s2394_s14 = smov %s2391_s22 }
 0x6a7   :  { %25 = sbr.rel (!%p23_p10) target bundleno = 14 (0xe), region = 174 }
 0x6ae   :  { %1200 = vsyncpa [#allocation5], 1 }
 0x6af   :  { %1202 = vsyncpa [#allocation5 + $0x1], 1 }
 0x6b0   :  { %1203 = vsyncpa [#allocation8], 1 }
 0x6b1   :  { %1205 = vsyncpa [#allocation8 + $0x1], 1 }
 0x6b2   :  { %1206 = vsyncpa [#allocation11], 1 }
 0x6b3   :  { %1207 = vsyncpa [#allocation6], 1 }
 0x6b4   :  { %1209 = vsyncpa [#allocation6 + $0x1], 1 }
 0x6b5   :  { %1210 = vsyncmov [#allocation3] }
 0x6b8   :  { %s1211_s17 = vpop.sfrf %1210 }
 0x6b9   :  { %p1380_p1 = scmp.ne.s32.totalorder %s1211_s17, 0 }
 0x6bb   :  { %1215 = shalt.err (%p1380_p1)  }

</bundles_post_ra>
